<compile_context>
chip_gen: v5e
topology: v5e:2x2
jax: 0.10.0
libtpu: 0.0.40
codegen_flags: <defaults>
</compile_context>

<pallas_src>
import jax
import jax.numpy as jnp
from jax.experimental import pallas as pl
from jax.experimental.pallas import tpu as pltpu

BN_EPS = 1e-5


def mlp_output_kernel(h_ref, wa_ref, scale_ref, shift_ref, wo_ref, bo_ref,
                      out_ref):
    h = h_ref[...]                                   # (TN, D, D) f32

    # ---- attn: contraction over the last axis with the (1,) out-feature ----
    # VPU multiply + lane reduce keeps the (TN, D) layout directly; no
    # underfilled MXU tile or lane-relayout reshape when D is small.
    s = jnp.sum(h * wa_ref[...], axis=-1)            # wa: (1,1,D) -> s: (TN, D)

    # ---- BatchNorm1d (eval, folded) + attn bias + ReLU; dropout = identity --
    z = jnp.maximum(s * scale_ref[...] + shift_ref[...], 0.0)   # (TN, D)

    # ---- final Linear: (TN, D) @ (D, O_pad) + (1, O_pad) ----
    out_ref[...] = (jnp.dot(z, wo_ref[...],
                            preferred_element_type=jnp.float32)
                    + bo_ref[...]).astype(out_ref.dtype)


def _round_up(x, m):
    return (x + m - 1) // m * m


def _choose_tile_n(N, D, elem_bytes=4, h_tile_budget=12 << 20):
    """Batch-tile size: big enough to amortize per-step overhead, small enough
    that 2x (double-buffer) h tiles fit comfortably in v7x VMEM."""
    tn = max(1, h_tile_budget // (D * D * elem_bytes))
    tn = min(tn, 512, N)
    if tn < N:
        # Output block's second-to-last dim must be a multiple of 8 (or == N).
        tn = max(8, (tn // 8) * 8)
    return tn


def mlp_output_forward(h, params, *, tile_n=None):
    N, D, D2 = h.shape
    assert D == D2, "expected h of shape (N, hidden_dim, hidden_dim)"
    O = params["w_out"].shape[1]
    O_pad = max(128, _round_up(O, 128))              # lane-dense output stores

    TN = tile_n if tile_n is not None else _choose_tile_n(N, D)
    grid = (pl.cdiv(N, TN),)

    # --- fold BN (eval) affine + attn bias into scale / shift (wrapper-side) --
    inv_std = jax.lax.rsqrt(params["run_var"] + BN_EPS)          # (1, D)
    scale = params["gamma"] * inv_std                            # (1, D)
    shift = params["beta"] + (params["b_attn"][0, 0]
                              - params["run_mean"]) * scale      # (1, D)

    wa = params["w_attn"].reshape(1, 1, D).astype(jnp.float32)   # (1, 1, D)

    # --- pad output weights/bias to a lane-dense 128-multiple column count ---
    wo = jnp.zeros((D, O_pad), jnp.float32).at[:, :O].set(params["w_out"])
    bo = jnp.zeros((1, O_pad), jnp.float32).at[:, :O].set(params["b_out"])

    h = h.astype(jnp.float32)

    # --- VMEM budget: 2x h tile + 2x out tile + resident params + headroom ---
    h_tile_bytes = TN * D * D * 4
    out_tile_bytes = TN * O_pad * 4
    param_bytes = (D + 2 * D + D * O_pad + O_pad) * 4
    vmem_limit = int(2 * (h_tile_bytes + out_tile_bytes)
                     + 2 * param_bytes + (4 << 20))
    vmem_limit = min(max(vmem_limit, 16 << 20), 96 << 20)

    cost = pl.CostEstimate(
        flops=2 * N * D * D + 2 * N * D * O_pad,
        transcendentals=0,
        bytes_accessed=4 * (N * D * D + N * O_pad + D * O_pad + 3 * D + O_pad),
    )

    out_padded = pl.pallas_call(
        mlp_output_kernel,
        out_shape=jax.ShapeDtypeStruct((N, O_pad), jnp.float32),
        grid=grid,
        in_specs=[
            pl.BlockSpec((TN, D, D), lambda i: (i, 0, 0)),   # h, streamed
            pl.BlockSpec((1, 1, D), lambda i: (0, 0, 0)),    # w_attn, resident
            pl.BlockSpec((1, D), lambda i: (0, 0)),          # scale, resident
            pl.BlockSpec((1, D), lambda i: (0, 0)),          # shift, resident
            pl.BlockSpec((D, O_pad), lambda i: (0, 0)),      # w_out, resident
            pl.BlockSpec((1, O_pad), lambda i: (0, 0)),      # b_out, resident
        ],
        out_specs=pl.BlockSpec((TN, O_pad), lambda i: (i, 0)),
        compiler_params=pltpu.CompilerParams(
            dimension_semantics=("parallel",),
            vmem_limit_bytes=vmem_limit),
        cost_estimate=cost,
    )(h, wa, scale, shift, wo, bo)

    return out_padded[:, :O]


def init_params(key, hidden_dim, output_dim):
    k1, k2, k3, k4 = jax.random.split(key, 4)
    # PyTorch nn.Linear default init: U(-1/sqrt(fan_in), 1/sqrt(fan_in))
    bnd_a = 1.0 / (hidden_dim ** 0.5)
    w_attn = jax.random.uniform(k1, (hidden_dim, 1), jnp.float32, -bnd_a, bnd_a)
    b_attn = jax.random.uniform(k2, (1, 1), jnp.float32, -bnd_a, bnd_a)
    # BatchNorm1d: gamma=1, beta=0, running_mean=0, running_var=1
    gamma = jnp.ones((1, hidden_dim), jnp.float32)
    beta = jnp.zeros((1, hidden_dim), jnp.float32)
    run_mean = jnp.zeros((1, hidden_dim), jnp.float32)
    run_var = jnp.ones((1, hidden_dim), jnp.float32)
    # Output Linear, stored pre-transposed: (hidden_dim, output_dim)
    bnd_o = 1.0 / (hidden_dim ** 0.5)
    w_out = jax.random.uniform(k3, (hidden_dim, output_dim), jnp.float32,
                               -bnd_o, bnd_o)
    b_out = jax.random.uniform(k4, (1, output_dim), jnp.float32, -bnd_o, bnd_o)
    return dict(w_attn=w_attn, b_attn=b_attn, gamma=gamma, beta=beta,
                run_mean=run_mean, run_var=run_var, w_out=w_out, b_out=b_out)


def ref_forward(h, p):
    s = jnp.einsum("ndk,ko->nd", h, p["w_attn"]) + p["b_attn"][0, 0]
    z = (s - p["run_mean"]) * jax.lax.rsqrt(p["run_var"] + BN_EPS)
    z = z * p["gamma"] + p["beta"]
    z = jnp.maximum(z, 0.0)
    return z @ p["w_out"] + p["b_out"]


if __name__ == "__main__":
    N, HIDDEN, OUT = 16, 32, 8
    key = jax.random.PRNGKey(0)
    k_h, k_p = jax.random.split(key)
    h = jax.random.normal(k_h, (N, HIDDEN, HIDDEN), jnp.float32)
    params = init_params(k_p, HIDDEN, OUT)

    # tile_n=8 forces a multi-step grid (grid=(2,)) so the pipelined /
    # tiled path is exercised even at this small demo size.
    out = mlp_output_forward(h, params, tile_n=8)
    out = jax.block_until_ready(out)

    expected = ref_forward(h, params)
    assert out.shape == (N, OUT)
    assert jnp.allclose(out, expected, atol=1e-4, rtol=1e-4), \
        float(jnp.max(jnp.abs(out - expected)))
    print("KERNEL_OK")
</pallas_src>

<mosaic_0001>
module attributes {stable_mosaic.version = 11 : i64} {
  func.func @mlp_output_kernel(%arg0: i32, %arg1: memref<8x32x32xf32, #tpu.memory_space<vmem>>, %arg2: memref<1x1x32xf32, #tpu.memory_space<vmem>>, %arg3: memref<1x32xf32, #tpu.memory_space<vmem>>, %arg4: memref<1x32xf32, #tpu.memory_space<vmem>>, %arg5: memref<32x128xf32, #tpu.memory_space<vmem>>, %arg6: memref<1x128xf32, #tpu.memory_space<vmem>>, %arg7: memref<8x128xf32, #tpu.memory_space<vmem>>) attributes {dimension_semantics = [#tpu.dimension_semantics<parallel>], iteration_bounds = array<i64: 2>, scalar_prefetch = 0 : i64, scratch_operands = 0 : i64, tpu.core_type = #tpu.core_type<tc>, window_params = [{transform_indices = @transform_0, window_bounds = array<i64: 8, 32, 32>}, {pipeline_mode = #tpu.pipeline_mode<synchronous>, transform_indices = @transform_1, window_bounds = array<i64: 1, 1, 32>}, {pipeline_mode = #tpu.pipeline_mode<synchronous>, transform_indices = @transform_2, window_bounds = array<i64: 1, 32>}, {pipeline_mode = #tpu.pipeline_mode<synchronous>, transform_indices = @transform_3, window_bounds = array<i64: 1, 32>}, {pipeline_mode = #tpu.pipeline_mode<synchronous>, transform_indices = @transform_4, window_bounds = array<i64: 32, 128>}, {pipeline_mode = #tpu.pipeline_mode<synchronous>, transform_indices = @transform_5, window_bounds = array<i64: 1, 128>}, {transform_indices = @transform_6, window_bounds = array<i64: 8, 128>}]} {
    %c0 = arith.constant 0 : index
    %c0_0 = arith.constant 0 : index
    %c0_1 = arith.constant 0 : index
    %0 = vector.load %arg1[%c0, %c0_0, %c0_1] : memref<8x32x32xf32, #tpu.memory_space<vmem>>, vector<8x32x32xf32>
    %c0_2 = arith.constant 0 : index
    %c0_3 = arith.constant 0 : index
    %c0_4 = arith.constant 0 : index
    %1 = vector.load %arg2[%c0_2, %c0_3, %c0_4] : memref<1x1x32xf32, #tpu.memory_space<vmem>>, vector<1x1x32xf32>
    %2 = vector.broadcast %1 : vector<1x1x32xf32> to vector<8x32x32xf32>
    %3 = arith.mulf %0, %2 : vector<8x32x32xf32>
    %cst = arith.constant dense<0.000000e+00> : vector<8x32xf32>
    %4 = vector.multi_reduction <add>, %3, %cst [2] : vector<8x32x32xf32> to vector<8x32xf32>
    %c0_5 = arith.constant 0 : index
    %c0_6 = arith.constant 0 : index
    %5 = vector.load %arg3[%c0_5, %c0_6] : memref<1x32xf32, #tpu.memory_space<vmem>>, vector<1x32xf32>
    %6 = vector.broadcast %5 : vector<1x32xf32> to vector<8x32xf32>
    %7 = arith.mulf %4, %6 : vector<8x32xf32>
    %c0_7 = arith.constant 0 : index
    %c0_8 = arith.constant 0 : index
    %8 = vector.load %arg4[%c0_7, %c0_8] : memref<1x32xf32, #tpu.memory_space<vmem>>, vector<1x32xf32>
    %9 = vector.broadcast %8 : vector<1x32xf32> to vector<8x32xf32>
    %10 = arith.addf %7, %9 : vector<8x32xf32>
    %cst_9 = arith.constant 0.000000e+00 : f32
    %11 = vector.broadcast %cst_9 : f32 to vector<8x32xf32>
    %12 = arith.maximumf %10, %11 : vector<8x32xf32>
    %c0_10 = arith.constant 0 : index
    %c0_11 = arith.constant 0 : index
    %13 = vector.load %arg5[%c0_10, %c0_11] : memref<32x128xf32, #tpu.memory_space<vmem>>, vector<32x128xf32>
    %cst_12 = arith.constant dense<0.000000e+00> : vector<8x128xf32>
    %14 = tpu.matmul %12, %13, %cst_12 {dimension_numbers = #tpu.dot_dimension_numbers<[1], [0], [0], [1], [0, 0, 1, 1], [], []>} : vector<8x32xf32>, vector<32x128xf32>, vector<8x128xf32> -> vector<8x128xf32>
    %c0_13 = arith.constant 0 : index
    %c0_14 = arith.constant 0 : index
    %15 = vector.load %arg6[%c0_13, %c0_14] : memref<1x128xf32, #tpu.memory_space<vmem>>, vector<1x128xf32>
    %16 = vector.broadcast %15 : vector<1x128xf32> to vector<8x128xf32>
    %17 = arith.addf %14, %16 : vector<8x128xf32>
    %c0_15 = arith.constant 0 : index
    %c0_16 = arith.constant 0 : index
    %18 = vector.load %arg7[%c0_15, %c0_16] : memref<8x128xf32, #tpu.memory_space<vmem>>, vector<8x128xf32>
    tpu.vector_store %arg7[%c0_15, %c0_16], %17 {strides = array<i32>} : memref<8x128xf32, #tpu.memory_space<vmem>>, vector<8x128xf32>,
    return
  }
  func.func @transform_0(%arg0: i32) -> (i32, i32, i32) {
    %c0_i32 = arith.constant 0 : i32
    %c0_i32_0 = arith.constant 0 : i32
    %c0_i32_1 = arith.constant 0 : i32
    return %arg0, %c0_i32, %c0_i32_0 : i32, i32, i32
  }
  func.func @transform_1(%arg0: i32) -> (i32, i32, i32) {
    %c0_i32 = arith.constant 0 : i32
    %c0_i32_0 = arith.constant 0 : i32
    %c0_i32_1 = arith.constant 0 : i32
    %c0_i32_2 = arith.constant 0 : i32
    return %c0_i32, %c0_i32_0, %c0_i32_1 : i32, i32, i32
  }
  func.func @transform_2(%arg0: i32) -> (i32, i32) {
    %c0_i32 = arith.constant 0 : i32
    %c0_i32_0 = arith.constant 0 : i32
    %c0_i32_1 = arith.constant 0 : i32
    return %c0_i32, %c0_i32_0 : i32, i32
  }
  func.func @transform_3(%arg0: i32) -> (i32, i32) {
    %c0_i32 = arith.constant 0 : i32
    %c0_i32_0 = arith.constant 0 : i32
    %c0_i32_1 = arith.constant 0 : i32
    return %c0_i32, %c0_i32_0 : i32, i32
  }
  func.func @transform_4(%arg0: i32) -> (i32, i32) {
    %c0_i32 = arith.constant 0 : i32
    %c0_i32_0 = arith.constant 0 : i32
    %c0_i32_1 = arith.constant 0 : i32
    return %c0_i32, %c0_i32_0 : i32, i32
  }
  func.func @transform_5(%arg0: i32) -> (i32, i32) {
    %c0_i32 = arith.constant 0 : i32
    %c0_i32_0 = arith.constant 0 : i32
    %c0_i32_1 = arith.constant 0 : i32
    return %c0_i32, %c0_i32_0 : i32, i32
  }
  func.func @transform_6(%arg0: i32) -> (i32, i32) {
    %c0_i32 = arith.constant 0 : i32
    %c0_i32_0 = arith.constant 0 : i32
    return %arg0, %c0_i32 : i32, i32
  }
}

</mosaic_0001>

<bundles_post_ra>
// kernel: tpu_custom_call.1
= control target key start
LH: loop header
LB: loop body
LE: loop exit
PB: predicated region body
PF: predicated region fallthrough
CT: control target
= control target key end

     0   :  { %s1770_s0 = inlined_call_operand.hbm [shape: f32[16,32,32], index: 0, kind: input, shape index: {}]   ;;  %s1771_s1 = inlined_call_operand.hbm [shape: f32[1,1,32], index: 1, kind: input, shape index: {}]   ;;  %s1772_s2 = inlined_call_operand.vmem [shape: f32[1,32], index: 2, kind: input, shape index: {}]   ;;  %s1773_s3 = inlined_call_operand.vmem [shape: f32[1,32], index: 3, kind: input, shape index: {}]   ;;  %s1774_s4 = inlined_call_operand.hbm [shape: f32[32,128], index: 4, kind: input, shape index: {}]   ;;  %s1775_s5 = inlined_call_operand.vmem [shape: f32[1,128], index: 5, kind: input, shape index: {}]   ;;  %s1776_s6 = inlined_call_operand.hbm [shape: f32[16,128], index: 6, kind: output, shape index: {}]  }
   0x1   :  { %1780 = sst [smem:[#allocation15_spill]] %s1771_s1 }
   0x2   :  { %1781 = sst [smem:[#allocation16_spill]] %s1774_s4 }
   0x3   :  { %11 = vsyncpa [#allocation3], 0 }
   0x4   :  { %13 = vsyncpa [#allocation3 + $0x1], 0 }
   0x5   :  { %14 = vsyncpa [#allocation6], 0 }
   0x6   :  { %15 = vsyncpa [#allocation4], 0 }
   0x7   :  { %17 = vsyncpa [#allocation4 + $0x1], 0  ;;  %s1278_s21 = smov 0   ;;  %s1280_s22 = smov 0  }
   0x8   :  { %s1282_s23 = smov 0   ;;  %s1284_s24 = smov 0  }
   0x9 LB: > { %1782 = sst [smem:[#allocation12_spill]] %s1232_s23  ;;  %s1299_s25 = sadd.s32 4294967295, %s1236_s24   ;;  %s1236_s24 = sphi %s1284_s24, %s1794_s24   ;;  %s1232_s23 = sphi %s1282_s23, %s1796_s23   ;;  %s1228_s22 = sphi %s1280_s22, %s1798_s22   ;;  %s1224_s21 = sphi %s1278_s21, %s1797_s21  }
   0xa   : > { %s970_s26 = sadd.s32 4294967294, %s1236_s24   ;;  %s1303_s27 = sadd.s32 1, %s1236_s24  }
   0xb   : > { %1783 = sst [smem:[#allocation13_spill]] %s1303_s27  ;;  %s30_s28 = sadd.s32 1, %s1232_s23 }
   0xc   : > { %s27_s29 = ssub.s32 %s1236_s24, %s1303_s27  ;;  %p37_p0 = scmp.ne.s32.totalorder %s1232_s23, %s1228_s22 }
   0xd   : > { %p28_p1 = scmp.eq.s32.totalorder %s27_s29, 0  ;;  %p38_p2 = scmp.eq.s32.totalorder %s1236_s24, 0 }
   0xe   : > { %p43_p3 = scmp.ne.s32.totalorder %s1228_s22, %s1224_s21  ;;  %p44_p4 = scmp.eq.s32.totalorder %s1299_s25, 0 }
   0xf   : > { %s1315_s30 = scalar_select %p28_p1, %s1232_s23, %s30_s28  }
  0x10   : > { %p1317_p5 = por %p38_p2, %p37_p0  ;;  %p1323_p6 = por %p44_p4, %p43_p3 }
  0x11   : > { %1784 = sst [smem:[#allocation14_spill]] %s1315_s30  ;;  %p172_p7 = scmp.eq.s32.totalorder %s1299_s25, 1 }
  0x12   : > { %p178_p8 = scmp.eq.s32.totalorder %s970_s26, 1  ;;  %p971_p9 = scmp.ge.s32.totalorder %s1236_s24, 1 }
  0x13   : > { %p185_p10 = scmp.lt.s32.totalorder %s1236_s24, 3  ;;  %p1330_p11 = por %p172_p7, %p37_p0 }
  0x14   : > { %p1334_p12 = por %p178_p8, %p43_p3  ;;  %s1790_s1 = sld [smem:[#allocation15_spill]] }
  0x15   : > { %p1338_p13 = pnand %p971_p9, %p185_p10  ;;  %s1238_s15 = smov [#allocation5]  }
  0x16   : > { %s199_s16 = sshll.u32 %s1238_s15, 4  ;;  %p1020_p3 = scmp.lt.s32.totalorder %s1236_s24, 2  ;;  %s200_s16 = int_to_ptr.vmem [resolvable:$true] %s199_s16 }
  0x17   : > { %p1003_p1 = pneg %p1338_p13  ;;  %s1791_s4 = sld [smem:[#allocation16_spill]] }
  0x18   : > { %p1356_p7 = pnand %p1020_p3, %p1317_p5  ;;  %s1239_s26 = smov [#allocation7]  }
  0x19   : > { %p1004_p2 = pnand %p1003_p1, %p44_p4  ;;  %s216_s28 = sshll.u32 %s1239_s26, 4  ;;  %s217_s28 = int_to_ptr.vmem [resolvable:$true] %s216_s28 }
  0x1a   : > { %s197_s14 = sshll.u32 %s1790_s1, 4  ;;  %s233_s29 = sand.u32 1, %s1232_s23   ;;  %s198_s14 = int_to_ptr.hbm [resolvable:$true] %s197_s14 }
  0x1b   : > { %1006 = dma.hbm_to_vmem [thread:$0]  (!%p1004_p2), %s198_s14, 16, %s200_s16, [#allocation6]  }
  0x1c   : > { %s1240_s12 = smov 128   ;;  %s1241_s13 = smov 8  }
  0x1d   : > { %s214_s19 = sshll.u32 %s1791_s4, 4  ;;  %s975_s15 = sshll.u32 %s233_s29, 8  ;;  %s215_s19 = int_to_ptr.hbm [resolvable:$true] %s214_s19 }
  0x1e   : > { %1009 = dma.hbm_to_vmem [thread:$0]  (!%p1004_p2), %s215_s19, 512, %s217_s28, [#allocation6], %s1240_s12, %s1240_s12, %s1241_s13  }
  0x1f   : > { %s990_s1 = sshll.u32 %s1236_s24, 8  ;;  %s237_s14 = scalar_lea.vmem [#allocation2], %s975_s15 }
  0x20   : > { %s243_s18 = scalar_lea.hbm %s1770_s0, %s990_s1  ;;  %s246_s7 = sshll.u32 %s237_s14, 4  ;;  %s247_s7 = int_to_ptr.vmem [resolvable:$true] %s246_s7 }
  0x21   : > { %s244_s16 = sshll.u32 %s243_s18, 4  ;;  %s234_s4 = scalar_lea.sflag [#allocation3], %s233_s29  ;;  %s245_s16 = int_to_ptr.hbm [resolvable:$true] %s244_s16 }
  0x22   : > { %s1136_s27 = sshra.s32 %s245_s16, 4  ;;  %p1140_p8 = pneg %p1356_p7  ;;  %s1137_s27 = int_to_ptr.hbm [resolvable:$true] %s1136_s27 }
  0x23   : > { %s1138_s26 = scalar_lea.hbm %s1137_s27, 256  ;;  %s1143_s23 = scalar_lea.hbm %s1770_s0, 512 }
  0x24   : > { %p1139_p5 = scmp.ne.s32.totalorder %s1137_s27, %s1138_s26  ;;  %p1144_p1 = scmp.lt.s32.totalorder %s1137_s27, %s1770_s0 }
  0x25   : > { %p1145_p2 = scmp.lt.s32.totalorder %s1143_s23, %s1138_s26 }
  0x26   : > { %p1141_p9 = pnand %p1140_p8, %p1139_p5 }
  0x27   : > { %p1146_p3 = por %p1145_p2, %p1144_p1 }
  0x28   : > { %p1142_p10 = pneg %p1141_p9 }
  0x2a   : > { %p1147_p0 = pnand %p1146_p3, %p1142_p10 }
  0x2c   : > { %1150 = shalt.err (!%p1147_p0)
}
  0x2d   : > { %1013 = dma.hbm_to_vmem [thread:$0]  (!%p1356_p7), %s245_s16, 4096, %s247_s7, %s234_s4, %s1240_s12, %s1240_s12, %s1241_s13  }
  0x2e   : > { %258 = sbr.rel (%p1338_p13) target bundleno = 622 (0x26e), region = 44  ;;  %s1378_s29 = sand.u32 (!%p1338_p13), 1, %s1228_s22  }
  0x2f   : > { %s980_s15 = sshll.u32 (!%p1338_p13), %s1378_s29, 8  ;;  %s261_s17 = scalar_lea.sflag (!%p1338_p13), [#allocation3], %s1378_s29 }
  0x30   : > { %s1382_s18 = scalar_lea.vmem (!%p1338_p13), [#allocation2], %s980_s15 }
  0x33   : > { %1211 = dma.done.wait (%p1323_p6), %s261_s17, 4096  }
  0x34   : > { %1213 = vsyncadd (%p1323_p6), %s261_s17, 4294963200 }
  0x35   : > { %1215 = dma.done.wait (%p44_p4), [#allocation6], 528  }
  0x36   : > { %1217 = vsyncadd (%p44_p4), [#allocation6], 4294966768  ;;  %v309_v0 = vld [vmem:[%s1382_s18 + $0x20] sm:$0xff]  ;;  %vm373_vm0 = vcmask 261120   ;;  %v307_v2 = vld [vmem:[%s1382_s18 + $0x10] sm:$0xff]  ;;  %vm769_vm1 = vcmask 130112  }
  0x37   : > { %v1393_v1 = vld [vmem:[#allocation5] ss:$0 sm:$0xff]  ;;  %v310_v7 = vld [vmem:[%s1382_s18 + $0x28] sm:$0xff]  ;;  %v308_v8 = vld [vmem:[%s1382_s18 + $0x18] sm:$0xff]  ;;  %vm773_vm2 = vcmask 195712   ;;  %vm777_vm3 = vcmask 261312  }
  0x38   : > { %v305_v3 = vld [vmem:[%s1382_s18] sm:$0xff]  ;;  %v345_v4 = vmul.f32 %v1393_v1, %v309_v0  ;;  %v343_v5 = vmul.f32 %v1393_v1, %v307_v2  ;;  %v306_v12 = vld [vmem:[%s1382_s18 + $0x8] sm:$0xff]  ;;  %v346_v13 = vmul.f32 %v1393_v1, %v310_v7  ;;  %v344_v14 = vmul.f32 %v1393_v1, %v308_v8  ;;  %v312_v20 = vld [vmem:[%s1382_s18 + $0x38] sm:$0xff]  ;;  %s983_s11 = sshll.u32 %s1378_s29, 3  ;;  %s986_s20 = sshll.u32 %s1299_s25, 3 }
  0x39   : > { %v341_v6 = vmul.f32 %v1393_v1, %v305_v3  ;;  %v342_v15 = vmul.f32 %v1393_v1, %v306_v12  ;;  %v313_v19 = vld [vmem:[%s1382_s18 + $0x40] sm:$0xff]  ;;  %v311_v21 = vld [vmem:[%s1382_s18 + $0x30] sm:$0xff]  ;;  %v348_v23 = vmul.f32 %v1393_v1, %v312_v20  ;;  %v316_v28 = vld [vmem:[%s1382_s18 + $0x58] sm:$0xff]  ;;  %vm828_vm4 = vcmask 1041409   ;;  %s876_s14 = scalar_lea.hbm %s1776_s6, %s986_s20  ;;  %s303_s26 = scalar_lea.vmem [#allocation8], %s983_s11 }
  0x3a   : > { %v386_v9 = vsel %vm373_vm0, %v345_v4, 0.0  ;;  %v380_v10 = vsel %vm373_vm0, %v343_v5, 0.0  ;;  %v389_v16 = vsel %vm373_vm0, %v346_v13, 0.0  ;;  %v383_v17 = vsel %vm373_vm0, %v344_v14, 0.0  ;;  %v315_v29 = vld [vmem:[%s1382_s18 + $0x50] sm:$0xff]  ;;  %v314_v30 = vld [vmem:[%s1382_s18 + $0x48] sm:$0xff] }
  0x3b   : > { %v374_v11 = vsel %vm373_vm0, %v341_v6, 0.0  ;;  %387 = vadd.xlane.f32.xlu2 %v386_v9  ;;  %381 = vadd.xlane.f32.xlu1 %v380_v10  ;;  %v377_v18 = vsel %vm373_vm0, %v342_v15, 0.0  ;;  %v349_v22 = vmul.f32 %v1393_v1, %v313_v19  ;;  %v347_v24 = vmul.f32 %v1393_v1, %v311_v21  ;;  %v319_v37 = vld [vmem:[%s1382_s18 + $0x70] sm:$0xff]  ;;  %v318_v38 = vld [vmem:[%s1382_s18 + $0x68] sm:$0xff]  ;;  %v317_v39 = vld [vmem:[%s1382_s18 + $0x60] sm:$0xff]  ;;  %s878_s19 = sshll.u32 %s303_s26, 4  ;;  %s879_s19 = int_to_ptr.vmem [resolvable:$true] %s878_s19 }
  0x3c   : > { %375 = vadd.xlane.f32.xlu0 %v374_v11  ;;  %v395_v26 = vsel %vm373_vm0, %v348_v23, 0.0  ;;  %v352_v31 = vmul.f32 %v1393_v1, %v316_v28  ;;  %v351_v32 = vmul.f32 %v1393_v1, %v315_v29  ;;  %v350_v33 = vmul.f32 %v1393_v1, %v314_v30  ;;  %v322_v46 = vld [vmem:[%s1382_s18 + $0x88] sm:$0xff]  ;;  %v321_v47 = vld [vmem:[%s1382_s18 + $0x80] sm:$0xff]  ;;  %v320_v48 = vld [vmem:[%s1382_s18 + $0x78] sm:$0xff]  ;;  %s880_s28 = sshll.u32 %s876_s14, 4  ;;  %s866_s30 = scalar_lea.sflag [#allocation4], %s1378_s29  ;;  %s881_s28 = int_to_ptr.hbm [resolvable:$true] %s880_s28 }
  0x3d   : > { %v398_v25 = vsel %vm373_vm0, %v349_v22, 0.0  ;;  %v392_v27 = vsel %vm373_vm0, %v347_v24, 0.0  ;;  %v355_v40 = vmul.f32 %v1393_v1, %v319_v37  ;;  %v354_v41 = vmul.f32 %v1393_v1, %v318_v38  ;;  %v325_v55 = vld [vmem:[%s1382_s18 + $0xa0] sm:$0xff]  ;;  %v324_v56 = vld [vmem:[%s1382_s18 + $0x98] sm:$0xff]  ;;  %v323_v57 = vld [vmem:[%s1382_s18 + $0x90] sm:$0xff]  ;;  %s1180_s1 = sshra.s32 %s881_s28, 4  ;;  %s1181_s1 = int_to_ptr.hbm [resolvable:$true] %s1180_s1 }
  0x3e   : > { %v407_v34 = vsel %vm373_vm0, %v352_v31, 0.0  ;;  %v404_v35 = vsel %vm373_vm0, %v351_v32, 0.0  ;;  %v401_v36 = vsel %vm373_vm0, %v350_v33, 0.0  ;;  %v353_v42 = vmul.f32 %v1393_v1, %v317_v39  ;;  %v328_v0 = vld [vmem:[%s1382_s18 + $0xb8] sm:$0xff]  ;;  %v327_v2 = vld [vmem:[%s1382_s18 + $0xb0] sm:$0xff]  ;;  %v326_v3 = vld [vmem:[%s1382_s18 + $0xa8] sm:$0xff]  ;;  %p1187_p0 = scmp.lt.s32.totalorder %s1181_s1, %s1776_s6 }
  0x3f   : > { %v416_v43 = vsel %vm373_vm0, %v355_v40, 0.0  ;;  %v413_v44 = vsel %vm373_vm0, %v354_v41, 0.0  ;;  %v358_v49 = vmul.f32 %v1393_v1, %v322_v46  ;;  %v357_v50 = vmul.f32 %v1393_v1, %v321_v47  ;;  %v331_v13 = vld [vmem:[%s1382_s18 + $0xd0] sm:$0xff]  ;;  %v330_v14 = vld [vmem:[%s1382_s18 + $0xc8] sm:$0xff]  ;;  %v329_v15 = vld [vmem:[%s1382_s18 + $0xc0] sm:$0xff]  ;;  %s1182_s25 = scalar_lea.hbm %s1181_s1, 8 }
  0x40   : > { %v410_v45 = vsel %vm373_vm0, %v353_v42, 0.0  ;;  %v356_v51 = vmul.f32 %v1393_v1, %v320_v48  ;;  %v361_v58 = vmul.f32 %v1393_v1, %v325_v55  ;;  %v360_v59 = vmul.f32 %v1393_v1, %v324_v56  ;;  %v334_v22 = vld [vmem:[%s1382_s18 + $0xe8] sm:$0xff]  ;;  %v333_v23 = vld [vmem:[%s1382_s18 + $0xe0] sm:$0xff]  ;;  %v332_v24 = vld [vmem:[%s1382_s18 + $0xd8] sm:$0xff]  ;;  %p1183_p4 = scmp.ne.s32.totalorder %s1181_s1, %s1182_s25 }
  0x41   : > { %v425_v52 = vsel %vm373_vm0, %v358_v49, 0.0  ;;  %v422_v53 = vsel %vm373_vm0, %v357_v50, 0.0  ;;  %v359_v60 = vmul.f32 %v1393_v1, %v323_v57  ;;  %v364_v4 = vmul.f32 %v1393_v1, %v328_v0  ;;  %v336_v32 = vld [vmem:[%s1382_s18 + $0xf8] sm:$0xff]  ;;  %v335_v33 = vld [vmem:[%s1382_s18 + $0xf0] sm:$0xff]  ;;  %v1073_v38 = vld [vmem:[%s1772_s2] ss:$0 sm:$0xff] }
  0x42   : > { %v419_v54 = vsel %vm373_vm0, %v356_v51, 0.0  ;;  %v434_v61 = vsel %vm373_vm0, %v361_v58, 0.0  ;;  %v431_v62 = vsel %vm373_vm0, %v360_v59, 0.0  ;;  %v363_v5 = vmul.f32 %v1393_v1, %v327_v2  ;;  %v1074_v42 = vld [vmem:[%s1773_s3] ss:$0 sm:$0xff]  ;;  %p1184_p6 = pnand %p1183_p4, %p1330_p11  ;;  %s1186_s18 = scalar_lea.hbm %s1776_s6, 16 }
  0x43   : > { %390 = vadd.xlane.f32.xlu2 %v389_v16  ;;  %384 = vadd.xlane.f32.xlu1 %v383_v17  ;;  %v428_v63 = vsel %vm373_vm0, %v359_v60, 0.0  ;;  %v473_v6 = vlaneseq  ;;  %v362_v7 = vmul.f32 %v1393_v1, %v326_v3  ;;  %v443_v9 = vsel %vm373_vm0, %v364_v4, 0.0  ;;  %p1188_p7 = scmp.lt.s32.totalorder %s1186_s18, %s1182_s25 }
  0x44   : > { %378 = vadd.xlane.f32.xlu0 %v377_v18  ;;  %v440_v10 = vsel %vm373_vm0, %v363_v5, 0.0  ;;  %v367_v16 = vmul.f32 %v1393_v1, %v331_v13  ;;  %v366_v17 = vmul.f32 %v1393_v1, %v330_v14  ;;  %v365_v18 = vmul.f32 %v1393_v1, %v329_v15  ;;  %p1185_p13 = pneg %p1184_p6 }
  0x45   : > { %v474_v8 = vshrl.u32 %v473_v6, 7  ;;  %v437_v12 = vsel %vm373_vm0, %v362_v7, 0.0  ;;  %v368_v28 = vmul.f32 %v1393_v1, %v332_v24  ;;  %v1242_v4 = vmov 0   ;;  %p1189_p5 = por %p1188_p7, %p1187_p0 }
  0x46   : > { %v452_v19 = vsel %vm373_vm0, %v367_v16, 0.0  ;;  %v449_v20 = vsel %vm373_vm0, %v366_v17, 0.0  ;;  %v446_v21 = vsel %vm373_vm0, %v365_v18, 0.0  ;;  %vm830_vm5 = vcmask 1042434  }
  0x47   : > { %1061 = vset.pattern.permute.xlu2 %v474_v8  ;;  %v481_v11 = vadd.s32 8, %v474_v8  ;;  %v455_v31 = vsel %vm373_vm0, %v368_v28, 0.0  ;;  %v493_v39 = vadd.s32 24, %v474_v8  ;;  %vm832_vm6 = vcmask 1043459   ;;  %p1190_p8 = pnand %p1189_p5, %p1185_p13 }
  0x48   : > { %vm834_vm7 = vcmask 1044484   ;;  %vm836_vm8 = vcmask 1045509   ;;  %vm838_vm9 = vcmask 1046534   ;;  %vm840_vm10 = vcmask 1047559  }
  0x49   : > { %1062 = vset.pattern.permute.xlu0 %v481_v11 }
  0x4b   : > { %399 = vadd.xlane.f32.xlu2 %v398_v25  ;;  %396 = vadd.xlane.f32.xlu1 %v395_v26  ;;  %v487_v25 = vadd.s32 16, %v474_v8  ;;  %v370_v26 = vmul.f32 %v1393_v1, %v334_v22 }
  0x4c   : > { %393 = vadd.xlane.f32.xlu0 %v392_v27  ;;  %v369_v27 = vmul.f32 %v1393_v1, %v333_v23 }
  0x4d   : > { %1063 = vset.pattern.permute.xlu1 %v487_v25  ;;  %v461_v29 = vsel %vm373_vm0, %v370_v26, 0.0 }
  0x4e   : > { %v458_v30 = vsel %vm373_vm0, %v369_v27, 0.0 }
  0x53   : > { %408 = vadd.xlane.f32.xlu2 %v407_v34  ;;  %405 = vadd.xlane.f32.xlu1 %v404_v35  ;;  %v372_v34 = vmul.f32 %v1393_v1, %v336_v32  ;;  %v371_v35 = vmul.f32 %v1393_v1, %v335_v33 }
  0x54   : > { %402 = vadd.xlane.f32.xlu0 %v401_v36 }
  0x55   : > { %v467_v36 = vsel %vm373_vm0, %v372_v34, 0.0  ;;  %v464_v37 = vsel %vm373_vm0, %v371_v35, 0.0 }
  0x5b   : > { %417 = vadd.xlane.f32.xlu2 %v416_v43  ;;  %414 = vadd.xlane.f32.xlu1 %v413_v44 }
  0x5c   : > { %411 = vadd.xlane.f32.xlu0 %v410_v45 }
  0x63   : > { %426 = vadd.xlane.f32.xlu2 %v425_v52  ;;  %423 = vadd.xlane.f32.xlu1 %v422_v53 }
  0x64   : > { %420 = vadd.xlane.f32.xlu0 %v419_v54 }
  0x6b   : > { %435 = vadd.xlane.f32.xlu2 %v434_v61  ;;  %432 = vadd.xlane.f32.xlu1 %v431_v62 }
  0x6c   : > { %429 = vadd.xlane.f32.xlu0 %v428_v63 }
  0x73   : > { %444 = vadd.xlane.f32.xlu2 %v443_v9  ;;  %441 = vadd.xlane.f32.xlu1 %v440_v10 }
  0x74   : > { %438 = vadd.xlane.f32.xlu0 %v437_v12 }
  0x7b   : > { %453 = vadd.xlane.f32.xlu2 %v452_v19  ;;  %450 = vadd.xlane.f32.xlu1 %v449_v20 }
  0x7c   : > { %447 = vadd.xlane.f32.xlu0 %v446_v21 }
  0x83   : > { %462 = vadd.xlane.f32.xlu2 %v461_v29  ;;  %459 = vadd.xlane.f32.xlu1 %v458_v30 }
  0x84   : > { %456 = vadd.xlane.f32.xlu0 %v455_v31 }
  0x8b   : > { %468 = vadd.xlane.f32.xlu1 %v467_v36 }
  0x8c   : > { %465 = vadd.xlane.f32.xlu0 %v464_v37 }
  0x9b   : > { %477 = vperm.xlu2 %1061, %v1073_v38  }
  0xa0   : > { %483 = vperm.xlu0 %1062, %v1073_v38  }
  0xa3   : > { %1064 = vset.pattern.permute.xlu2 %v493_v39 }
  0xa4   : > { %489 = vperm.xlu1 %1063, %v1073_v38  }
  0xa8   : > { %1069 = vset.pattern.permute.xlu0 %v1242_v4 }
  0xab   : > { %495 = vperm.xlu2 %1064, %v1073_v38  }
  0xac   : > { %1066 = vset.pattern.permute.xlu1 %v481_v11 }
  0xae   : > { %v388_v40 = vpop.xlane.xlu2 %387  ;;  %v1494_v41 = vpop.xlane.xlu1 %381 }
  0xaf   : > { %v376_v1 = vpop.xlane.xlu0 %375 }
  0xb3   : > { %1065 = vset.pattern.permute.xlu2 %v474_v8 }
  0xb4   : > { %546 = vperm.xlu1 %1066, %v1074_v42  }
  0xb6   : > { %v1499_v43 = vpop.xlane.xlu2 %390  ;;  %v1501_v44 = vpop.xlane.xlu1 %384 }
  0xb7   : > { %v1503_v45 = vpop.xlane.xlu0 %378 }
  0xbb   : > { %540 = vperm.xlu2 %1065, %v1074_v42  }
  0xbc   : > { %1068 = vset.pattern.permute.xlu1 %v493_v39 }
  0xbe   : > { %v1505_v46 = vpop.xlane.xlu2 %399  ;;  %v1507_v47 = vpop.xlane.xlu1 %396 }
  0xbf   : > { %v394_v48 = vpop.xlane.xlu0 %393 }
  0xc3   : > { %1067 = vset.pattern.permute.xlu2 %v487_v25 }
  0xc4   : > { %558 = vperm.xlu1 %1068, %v1074_v42  }
  0xc6   : > { %v1509_v49 = vpop.xlane.xlu2 %408  ;;  %v1511_v50 = vpop.xlane.xlu1 %405 }
  0xc7   : > { %v1513_v51 = vpop.xlane.xlu0 %402 }
  0xcb   : > { %552 = vperm.xlu2 %1067, %v1074_v42  }
  0xcc   : > { %1071 = vset.pattern.permute.xlu1 %v1242_v4 }
  0xce   : > { %v1515_v52 = vpop.xlane.xlu2 %417  ;;  %v1517_v53 = vpop.xlane.xlu1 %414 }
  0xcf   : > { %v1519_v54 = vpop.xlane.xlu0 %411 }
  0xd3   : > { %1070 = vset.pattern.permute.xlu2 %v1242_v4 }
  0xd6   : > { %v1521_v55 = vpop.xlane.xlu2 %426  ;;  %v424_v56 = vpop.xlane.xlu1 %423 }
  0xd7   : > { %v1523_v59 = vpop.xlane.xlu0 %420 }
  0xde   : > { %v436_v57 = vpop.xlane.xlu2 %435  ;;  %v433_v58 = vpop.xlane.xlu1 %432 }
  0xdf   : > { %v1527_v62 = vpop.xlane.xlu0 %429 }
  0xe6   : > { %v445_v60 = vpop.xlane.xlu2 %444  ;;  %v1525_v61 = vpop.xlane.xlu1 %441 }
  0xe7   : > { %v1529_v2 = vpop.xlane.xlu0 %438 }
  0xee   : > { %v454_v63 = vpop.xlane.xlu2 %453  ;;  %v451_v0 = vpop.xlane.xlu1 %450 }
  0xef   : > { %v448_v7 = vpop.xlane.xlu0 %447 }
  0xf6   : > { %v1531_v3 = vpop.xlane.xlu2 %462  ;;  %v460_v5 = vpop.xlane.xlu1 %459 }
  0xf7   : > { %v457_v15 = vpop.xlane.xlu0 %456 }
  0xfe   : > { %v1533_v8 = vpop.permute.xlu2 %477  ;;  %v469_v14 = vpop.xlane.xlu1 %468 }
  0xff   : > { %v1536_v9 = vmul.f32 %v1533_v8, %v436_v57  ;;  %v1539_v10 = vmul.f32 %v1533_v8, %v424_v56  ;;  %v525_v11 = vmul.f32 %v1533_v8, %v448_v7  ;;  %v529_v12 = vmul.f32 %v1533_v8, %v460_v5  ;;  %v466_v26 = vpop.xlane.xlu0 %465 }
 0x100   : > { %v505_v20 = vmul.f32 %v1533_v8, %v388_v40  ;;  %v501_v21 = vmul.f32 %v1533_v8, %v376_v1 }
 0x106   : > { %v1543_v13 = vpop.permute.xlu2 %495 }
 0x107   : > { %v1546_v16 = vmul.f32 %v1543_v13, %v445_v60  ;;  %v1549_v17 = vmul.f32 %v1543_v13, %v433_v58  ;;  %v1552_v18 = vmul.f32 %v1543_v13, %v469_v14  ;;  %v1555_v19 = vmul.f32 %v1543_v13, %v457_v15 }
 0x112   : > { %v1577_v33 = vpop.permute.xlu0 %483 }
 0x113   : > { %v502_v37 = vmul.f32 %v1577_v33, %v1503_v45  ;;  %v506_v45 = vmul.f32 %v1577_v33, %v1499_v43  ;;  %v504_v43 = vmul.f32 %v1543_v13, %v1501_v44  ;;  %v508_v44 = vmul.f32 %v1543_v13, %v1507_v47 }
 0x114   : > { %v514_v47 = vmul.f32 %v1577_v33, %v1517_v53 }
 0x115   : > { %v1559_v22 = vpop.permute.xlu2 %540 }
 0x116   : > { %v568_v23 = vadd.f32 %v1559_v22, %v505_v20  ;;  %v564_v24 = vadd.f32 %v1559_v22, %v501_v21  ;;  %v1563_v25 = vpop.permute.xlu1 %489  ;;  %v1566_v29 = vadd.f32 %v1559_v22, %v525_v11  ;;  %v1572_v31 = vadd.f32 %v1559_v22, %v529_v12 }
 0x117   : > { %v1569_v30 = vmul.f32 %v1563_v25, %v454_v63  ;;  %v1575_v32 = vmul.f32 %v1563_v25, %v466_v26  ;;  %v503_v34 = vmul.f32 %v1563_v25, %v1494_v41  ;;  %v507_v35 = vmul.f32 %v1563_v25, %v394_v48 }
 0x118   : > { %v600_v27 = vmax.f32 %v568_v23, 0.0  ;;  %v596_v28 = vmax.f32 %v564_v24, 0.0  ;;  %v526_v41 = vmul.f32 %v1577_v33, %v451_v0  ;;  %v510_v48 = vmul.f32 %v1577_v33, %v1513_v51 }
 0x119   : > { %v511_v0 = vmul.f32 %v1563_v25, %v1511_v50  ;;  %v509_v51 = vmul.f32 %v1533_v8, %v1505_v46  ;;  %v512_v50 = vmul.f32 %v1543_v13, %v1509_v49  ;;  %v513_v46 = vmul.f32 %v1533_v8, %v1519_v54 }
 0x11a   : > { %681 = vperm.xlu1 %1071, %v600_v27   ;;  %669 = vperm.xlu0 %1069, %v596_v28   ;;  %v518_v49 = vmul.f32 %v1577_v33, %v1521_v55  ;;  %v515_v54 = vmul.f32 %v1563_v25, %v1515_v52  ;;  %v516_v55 = vmul.f32 %v1543_v13, %v1523_v59 }
 0x11b   : > { %v572_v11 = vadd.f32 %v1559_v22, %v509_v51  ;;  %v576_v24 = vadd.f32 %v1559_v22, %v513_v46  ;;  %v584_v52 = vadd.f32 %v1559_v22, %v1536_v9  ;;  %v522_v59 = vmul.f32 %v1577_v33, %v1529_v2 }
 0x11c   : > { %v519_v9 = vmul.f32 %v1563_v25, %v1527_v62  ;;  %v620_v62 = vmax.f32 %v1566_v29, 0.0 }
 0x11d   : > { %v604_v21 = vmax.f32 %v572_v11, 0.0  ;;  %v608_v28 = vmax.f32 %v576_v24, 0.0  ;;  %v1665_v11 = vand.u32 127, %v473_v6 }
 0x11f   : > { %v1677_v46 = vadd.s32 4294967280, %v1665_v11 }
 0x125   : > { %v1582_v36 = vpop.permute.xlu2 %552 }
 0x126   : > { %v1586_v38 = vpop.permute.xlu1 %546  ;;  %v566_v39 = vadd.f32 %v1582_v36, %v503_v34  ;;  %v570_v40 = vadd.f32 %v1582_v36, %v507_v35  ;;  %v574_v7 = vadd.f32 %v1582_v36, %v511_v0  ;;  %v578_v35 = vadd.f32 %v1582_v36, %v515_v54 }
 0x127   : > { %v565_v1 = vadd.f32 %v1586_v38, %v502_v37  ;;  %v1597_v58 = vadd.f32 %v1586_v38, %v526_v41  ;;  %v573_v60 = vadd.f32 %v1586_v38, %v510_v48  ;;  %v569_v63 = vadd.f32 %v1586_v38, %v506_v45 }
 0x128   : > { %v598_v42 = vmax.f32 %v566_v39, 0.0  ;;  %v602_v56 = vmax.f32 %v570_v40, 0.0  ;;  %v606_v15 = vmax.f32 %v574_v7, 0.0  ;;  %v581_v8 = vadd.f32 %v1586_v38, %v518_v49 }
 0x129   : > { %v597_v57 = vmax.f32 %v565_v1, 0.0  ;;  %v605_v4 = vmax.f32 %v573_v60, 0.0  ;;  %v601_v5 = vmax.f32 %v569_v63, 0.0  ;;  %v577_v37 = vadd.f32 %v1586_v38, %v514_v47 }
 0x12a   : > { %675 = vperm.xlu1 %1071, %v598_v42   ;;  %687 = vperm.xlu0 %1069, %v602_v56   ;;  %v613_v39 = vmax.f32 %v581_v8, 0.0  ;;  %v610_v40 = vmax.f32 %v578_v35, 0.0  ;;  %v580_v42 = vadd.f32 %v1559_v22, %v1539_v10  ;;  %v616_v56 = vmax.f32 %v584_v52, 0.0 }
 0x12b   : > { %672 = vperm.xlu2 %1070, %v597_v57   ;;  %v609_v1 = vmax.f32 %v577_v37, 0.0  ;;  %v523_v48 = vmul.f32 %v1563_v25, %v1525_v61  ;;  %v585_v45 = vadd.f32 %v1586_v38, %v522_v59  ;;  %v582_v10 = vadd.f32 %v1582_v36, %v519_v9 }
 0x12c   : > { %v612_v41 = vmax.f32 %v580_v42, 0.0  ;;  %v590_v51 = vadd.f32 %v1582_v36, %v1569_v30  ;;  %v594_v30 = vadd.f32 %v1582_v36, %v1575_v32 }
 0x12d   : > { %v586_v13 = vadd.f32 %v1582_v36, %v523_v48  ;;  %v617_v60 = vmax.f32 %v585_v45, 0.0  ;;  %v614_v63 = vmax.f32 %v582_v10, 0.0 }
 0x12f   : > { %v618_v22 = vmax.f32 %v586_v13, 0.0 }
 0x132   : > { %696 = vperm.xlu1 %1071, %v605_v4  }
 0x133   : > { %684 = vperm.xlu2 %1070, %v601_v5   ;;  %v530_v5 = vmul.f32 %v1577_v33, %v1531_v3 }
 0x135   : > { %v593_v0 = vadd.f32 %v1586_v38, %v530_v5  ;;  %v624_v38 = vmax.f32 %v1572_v31, 0.0 }
 0x136   : > { %v1609_v12 = vpop.permute.xlu1 %558 }
 0x137   : > { %v567_v14 = vadd.f32 %v1609_v12, %v504_v43  ;;  %v575_v23 = vadd.f32 %v1609_v12, %v512_v50  ;;  %v571_v26 = vadd.f32 %v1609_v12, %v508_v44  ;;  %v579_v53 = vadd.f32 %v1609_v12, %v516_v55 }
 0x138   : > { %v587_v61 = vadd.f32 %v1609_v12, %v1546_v16  ;;  %v583_v2 = vadd.f32 %v1609_v12, %v1549_v17  ;;  %v625_v7 = vmax.f32 %v593_v0, 0.0  ;;  %v622_v16 = vmax.f32 %v590_v51, 0.0 }
 0x139   : > { %v599_v20 = vmax.f32 %v567_v14, 0.0  ;;  %v607_v27 = vmax.f32 %v575_v23, 0.0  ;;  %v603_v34 = vmax.f32 %v571_v26, 0.0  ;;  %v611_v57 = vmax.f32 %v579_v53, 0.0 }
 0x13a   : > { %699 = vperm.xlu1 %1071, %v606_v15   ;;  %v619_v4 = vmax.f32 %v587_v61, 0.0  ;;  %v615_v25 = vmax.f32 %v583_v2, 0.0  ;;  %v621_v43 = vmax.f32 %v1597_v58, 0.0  ;;  %v595_v17 = vadd.f32 %v1609_v12, %v1552_v18  ;;  %v631_v61 = vld [vmem:[#allocation7 + $0x18] sm:$0xff] }
 0x13b   : > { %678 = vperm.xlu0 %1069, %v599_v20   ;;  %693 = vperm.xlu2 %1070, %v604_v21   ;;  %v591_v3 = vadd.f32 %v1609_v12, %v1555_v19  ;;  %v626_v58 = vmax.f32 %v594_v30, 0.0  ;;  %v1668_v18 = vadd.s32 4294967288, %v1665_v11  ;;  %v1680_v44 = vadd.s32 4294967272, %v1665_v11  ;;  %v630_v30 = vld [vmem:[#allocation7 + $0x10] sm:$0xff] }
 0x13c   : > { %v627_v29 = vmax.f32 %v595_v17, 0.0  ;;  %856 = vmatpush.msra.mxu0 %v631_v61 }
 0x13d   : > { %v623_v33 = vmax.f32 %v591_v3, 0.0 }
 0x13e   : > { %857 = vmatpush.msra.mxu0 %v630_v30 }
 0x142   : > { %702 = vperm.xlu1 %1071, %v607_v27  }
 0x143   : > { %705 = vperm.xlu0 %1069, %v608_v28   ;;  %690 = vperm.xlu2 %1070, %v603_v34  }
 0x14a   : > { %720 = vperm.xlu1 %1071, %v613_v39  }
 0x14b   : > { %711 = vperm.xlu0 %1069, %v610_v40   ;;  %708 = vperm.xlu2 %1070, %v609_v1  }
 0x152   : > { %729 = vperm.xlu1 %1071, %v616_v56  }
 0x153   : > { %714 = vperm.xlu0 %1069, %v611_v57   ;;  %717 = vperm.xlu2 %1070, %v612_v41  }
 0x15a   : > { %735 = vperm.xlu1 %1071, %v618_v22  }
 0x15b   : > { %732 = vperm.xlu0 %1069, %v617_v60   ;;  %723 = vperm.xlu2 %1070, %v614_v63  }
 0x162   : > { %738 = vperm.xlu1 %1071, %v619_v4  }
 0x163   : > { %741 = vperm.xlu0 %1069, %v620_v62   ;;  %726 = vperm.xlu2 %1070, %v615_v25  }
 0x16a   : > { %756 = vperm.xlu1 %1071, %v625_v7  }
 0x16b   : > { %747 = vperm.xlu0 %1069, %v622_v16   ;;  %744 = vperm.xlu2 %1070, %v621_v43  }
 0x172   : > { %762 = vperm.xlu1 %1071, %v627_v29  }
 0x173   : > { %750 = vperm.xlu0 %1069, %v623_v33   ;;  %753 = vperm.xlu2 %1070, %v624_v38  }
 0x17b   : > { %759 = vperm.xlu2 %1070, %v626_v58   ;;  %v629_v58 = vld [vmem:[#allocation7 + $0x8] sm:$0xff] }
 0x17c   : > { %858 = vmatpush.msra.mxu0 %v629_v58 }
 0x185   : > { %v673_v14 = vpop.permute.xlu2 %672 }
 0x186   : > { %v768_v19 = vperm.slane %v673_v14, %v1668_v18 }
 0x18c   : > { %v682_v12 = vpop.permute.xlu1 %681  ;;  %v670_v31 = vpop.permute.xlu0 %669 }
 0x18d   : > { %v779_v15 = vperm.slane %v682_v12, %v1665_v11  ;;  %v766_v20 = vperm.slane %v670_v31, %v1665_v11  ;;  %v685_v21 = vpop.permute.xlu2 %684  ;;  %v628_v12 = vld [vmem:[#allocation7] sm:$0xff] }
 0x18e   : > { %v780_v32 = vperm.slane %v685_v21, %v1668_v18  ;;  %859 = vmatpush.msra.mxu0 %v628_v12 }
 0x18f   : > { %v770_v36 = vsel %vm769_vm1, %v768_v19, %v766_v20 }
 0x190   : > { %v781_v6 = vsel %vm769_vm1, %v780_v32, %v779_v15 }
 0x195   : > { %v694_v50 = vpop.permute.xlu2 %693 }
 0x196   : > { %v786_v56 = vperm.slane %v694_v50, %v1665_v11 }
 0x19c   : > { %v676_v23 = vpop.permute.xlu1 %675  ;;  %v688_v24 = vpop.permute.xlu0 %687 }
 0x19d   : > { %v772_v26 = vperm.slane %v676_v23, %v1677_v46  ;;  %v782_v27 = vperm.slane %v688_v24, %v1677_v46  ;;  %v691_v28 = vpop.permute.xlu2 %690 }
 0x19e   : > { %v784_v34 = vperm.slane %v691_v28, %v1680_v44 }
 0x19f   : > { %v774_v49 = vsel %vm773_vm2, %v772_v26, %v770_v36  ;;  %v783_v54 = vsel %vm773_vm2, %v782_v27, %v781_v6 }
 0x1a0   : > { %v785_v47 = vsel %vm777_vm3, %v784_v34, %v783_v54 }
 0x1a4   : > { %v697_v8 = vpop.permute.xlu1 %696 }
 0x1a5   : > { %v709_v35 = vpop.permute.xlu2 %708  ;;  %v787_v52 = vperm.slane %v697_v8, %v1668_v18 }
 0x1a6   : > { %v794_v0 = vperm.slane %v709_v35, %v1668_v18 }
 0x1a7   : > { %v788_v41 = vsel %vm769_vm1, %v787_v52, %v786_v56 }
 0x1ac   : > { %v700_v37 = vpop.permute.xlu1 %699 }
 0x1ad   : > { %v679_v39 = vpop.permute.xlu0 %678  ;;  %v718_v40 = vpop.permute.xlu2 %717  ;;  %v789_v42 = vperm.slane %v700_v37, %v1677_v46 }
 0x1ae   : > { %v776_v1 = vperm.slane %v679_v39, %v1680_v44  ;;  %v800_v2 = vperm.slane %v718_v40, %v1665_v11 }
 0x1af   : > { %v790_v9 = vsel %vm773_vm2, %v789_v42, %v788_v41 }
 0x1b0   : > { %v778_v55 = vsel %vm777_vm3, %v776_v1, %v774_v49 }
 0x1b1   : > { %v829_v53 = vsel %vm828_vm4, %v785_v47, %v778_v55 }
 0x1b4   : > { %v703_v57 = vpop.permute.xlu1 %702 }
 0x1b5   : > { %v791_v48 = vperm.slane %v703_v57, %v1680_v44  ;;  %v706_v59 = vpop.permute.xlu0 %705  ;;  %v724_v10 = vpop.permute.xlu2 %723 }
 0x1b6   : > { %v793_v4 = vperm.slane %v706_v59, %v1665_v11  ;;  %v803_v51 = vperm.slane %v724_v10, %v1677_v46 }
 0x1b7   : > { %v792_v13 = vsel %vm777_vm3, %v791_v48, %v790_v9 }
 0x1b8   : > { %v831_v45 = vsel %vm830_vm5, %v792_v13, %v829_v53  ;;  %v795_v17 = vsel %vm769_vm1, %v794_v0, %v793_v4 }
 0x1bc   : > { %v721_v22 = vpop.permute.xlu1 %720 }
 0x1bd   : > { %v712_v60 = vpop.permute.xlu0 %711  ;;  %v801_v63 = vperm.slane %v721_v22, %v1668_v18  ;;  %v727_v62 = vpop.permute.xlu2 %726 }
 0x1be   : > { %v796_v5 = vperm.slane %v712_v60, %v1677_v46  ;;  %v805_v16 = vperm.slane %v727_v62, %v1680_v44 }
 0x1bf   : > { %v802_v25 = vsel %vm769_vm1, %v801_v63, %v800_v2 }
 0x1c0   : > { %v804_v3 = vsel %vm773_vm2, %v803_v51, %v802_v25  ;;  %v797_v33 = vsel %vm773_vm2, %v796_v5, %v795_v17 }
 0x1c1   : > { %v806_v14 = vsel %vm777_vm3, %v805_v16, %v804_v3 }
 0x1c4   : > { %v730_v7 = vpop.permute.xlu1 %729 }
 0x1c5   : > { %v715_v43 = vpop.permute.xlu0 %714  ;;  %v745_v21 = vpop.permute.xlu2 %744  ;;  %v807_v36 = vperm.slane %v730_v7, %v1665_v11 }
 0x1c6   : > { %v798_v29 = vperm.slane %v715_v43, %v1680_v44  ;;  %v815_v1 = vperm.slane %v745_v21, %v1668_v18 }
 0x1c8   : > { %v799_v38 = vsel %vm777_vm3, %v798_v29, %v797_v33 }
 0x1c9   : > { %v833_v19 = vsel %vm832_vm6, %v799_v38, %v831_v45 }
 0x1ca   : > { %v835_v31 = vsel %vm834_vm7, %v806_v14, %v833_v19 }
 0x1cc   : > { %v736_v15 = vpop.permute.xlu1 %735 }
 0x1cd   : > { %v733_v20 = vpop.permute.xlu0 %732  ;;  %v810_v50 = vperm.slane %v736_v15, %v1677_v46  ;;  %v754_v49 = vpop.permute.xlu2 %753 }
 0x1ce   : > { %v808_v32 = vperm.slane %v733_v20, %v1668_v18  ;;  %v821_v37 = vperm.slane %v754_v49, %v1665_v11 }
 0x1d0   : > { %v809_v6 = vsel %vm769_vm1, %v808_v32, %v807_v36 }
 0x1d1   : > { %v811_v27 = vsel %vm773_vm2, %v810_v50, %v809_v6 }
 0x1d4   : > { %v739_v23 = vpop.permute.xlu1 %738 }
 0x1d5   : > { %v812_v24 = vperm.slane %v739_v23, %v1680_v44  ;;  %v742_v26 = vpop.permute.xlu0 %741  ;;  %v760_v39 = vpop.permute.xlu2 %759 }
 0x1d6   : > { %v814_v35 = vperm.slane %v742_v26, %v1665_v11  ;;  %v824_v56 = vperm.slane %v760_v39, %v1677_v46 }
 0x1d7   : > { %v813_v28 = vsel %vm777_vm3, %v812_v24, %v811_v27 }
 0x1d8   : > { %v837_v34 = vsel %vm836_vm8, %v813_v28, %v835_v31  ;;  %v816_v57 = vsel %vm769_vm1, %v815_v1, %v814_v35 }
 0x1dc   : > { %v757_v54 = vpop.permute.xlu1 %756 }
 0x1dd   : > { %v748_v47 = vpop.permute.xlu0 %747  ;;  %v822_v8 = vperm.slane %v757_v54, %v1668_v18 }
 0x1de   : > { %v817_v40 = vperm.slane %v748_v47, %v1677_v46  ;;  %v1075_v46 = vld [vmem:[%s1775_s5] ss:$0 sm:$0xff] }
 0x1df   : > { %v823_v52 = vsel %vm769_vm1, %v822_v8, %v821_v37 }
 0x1e0   : > { %v818_v11 = vsel %vm773_vm2, %v817_v40, %v816_v57  ;;  %v825_v48 = vsel %vm773_vm2, %v824_v56, %v823_v52 }
 0x1e4   : > { %v763_v55 = vpop.permute.xlu1 %762 }
 0x1e5   : > { %v826_v53 = vperm.slane %v763_v55, %v1680_v44  ;;  %v751_v42 = vpop.permute.xlu0 %750 }
 0x1e6   : > { %v819_v41 = vperm.slane %v751_v42, %v1680_v44 }
 0x1e7   : > { %v827_v59 = vsel %vm777_vm3, %v826_v53, %v825_v48 }
 0x1e8   : > { %v820_v18 = vsel %vm777_vm3, %v819_v41, %v818_v11 }
 0x1e9   : > { %v839_v9 = vsel %vm838_vm9, %v820_v18, %v837_v34 }
 0x1ea   : > { %v841_v13 = vsel %vm840_vm10, %v827_v59, %v839_v9 }
 0x1eb   : > { %984 = vmatmul.msk.f32.vlgmr.msra.gmra.mxu0 %vm373_vm0, %v841_v13 }
 0x268   : > { %v861_v44 = vpop.f32.mrf.mxu0 }
 0x269   : > { %v862_v45 = vadd.f32 %v1075_v46, %v861_v44 }
 0x26b   : > { %864 = vst [vmem:[%s303_s26] sm:$0xff] %v862_v45 }
 0x26c   : > { %1193 = shalt.err (!%p1190_p8)
}
 0x26d   : > { %1001 = dma.vmem_to_hbm [thread:$0]  (%p1330_p11), %s879_s19, 128, %s881_s28, %s866_s30  }
 0x26e PF: > { %s892_s29 = sand.u32 1, %s1224_s21   ;;  %p1793_p9 = scmp.ge.s32.totalorder %s1236_s24, 2 }
 0x26f   : > { %s893_s27 = scalar_lea.sflag [#allocation4], %s892_s29 }
 0x270   : > { %p1015_p10 = pnand %p1793_p9, %p1334_p12 }
 0x272   : > { %p1016_p1 = pneg %p1015_p10 }
 0x274   : > { %1219 = dma.done.wait (%p1016_p1), %s893_s27, 128  }
 0x275   : > { %1221 = vsyncadd (%p1016_p1), %s893_s27, 4294967168  ;;  %s1794_s24 = sld [smem:[#allocation13_spill]]  ;;  %s1797_s21 = smov %s1228_s22 }
 0x276   : > { %s1795_s8 = sld [smem:[#allocation12_spill]] }
 0x277   : > { %s1796_s23 = sld [smem:[#allocation14_spill]] }
 0x27b   : > { %p20_p2 = scmp.ge.s32.totalorder %s1794_s24, 4  }
 0x27c   : > { %s1798_s22 = smov %s1795_s8 }
 0x27d   :  { %22 = sbr.rel (!%p20_p2) target bundleno = 9 (0x9), region = 97 }
 0x282   :  { %899 = vsyncpa [#allocation3], 1 }
 0x283   :  { %901 = vsyncpa [#allocation3 + $0x1], 1 }
 0x284   :  { %902 = vsyncpa [#allocation6], 1 }
 0x285   :  { %903 = vsyncpa [#allocation4], 1 }
 0x286   :  { %905 = vsyncpa [#allocation4 + $0x1], 1 }

</bundles_post_ra>
